<compile_context>
chip_gen: v7x
topology: tpu7x:2x2x1
jax: 0.10.0
libtpu: 0.0.40
codegen_flags: <defaults>
</compile_context>

<pallas_src>
import functools

import jax
import jax.numpy as jnp
from jax.experimental import pallas as pl
from jax.experimental.pallas import tpu as pltpu


def _round_up(x, m):
    return (x + m - 1) // m * m


# ---------------------------------------------------------------------------
# Kernels
# ---------------------------------------------------------------------------
def _fused_bias_kernel(adj_ref, x_ref, w_ref, b_ref, o_ref):
    # Whole problem resident in VMEM: support never touches HBM.
    support = jnp.dot(x_ref[...], w_ref[...], preferred_element_type=jnp.float32)
    out = jnp.dot(adj_ref[...], support.astype(adj_ref.dtype),
                  preferred_element_type=jnp.float32)
    o_ref[...] = out + b_ref[...]


def _fused_nobias_kernel(adj_ref, x_ref, w_ref, o_ref):
    support = jnp.dot(x_ref[...], w_ref[...], preferred_element_type=jnp.float32)
    o_ref[...] = jnp.dot(adj_ref[...], support.astype(adj_ref.dtype),
                         preferred_element_type=jnp.float32)


def _support_kernel(x_ref, w_ref, s_ref):
    # support = x @ w, each row block computed exactly once.
    s_ref[...] = jnp.dot(x_ref[...], w_ref[...],
                         preferred_element_type=jnp.float32).astype(s_ref.dtype)


def _aggregate_bias_kernel(adj_ref, s_ref, b_ref, o_ref, acc_ref):
    # out[i] = sum_k adj[i, k] @ support[k]  (+ bias), f32 accumulator in VMEM.
    k = pl.program_id(1)

    @pl.when(k == 0)
    def _():
        acc_ref[...] = jnp.zeros_like(acc_ref)

    acc_ref[...] += jnp.dot(adj_ref[...], s_ref[...],
                            preferred_element_type=jnp.float32)

    @pl.when(k == pl.num_programs(1) - 1)
    def _():
        o_ref[...] = acc_ref[...] + b_ref[...]


def _aggregate_nobias_kernel(adj_ref, s_ref, o_ref, acc_ref):
    k = pl.program_id(1)

    @pl.when(k == 0)
    def _():
        acc_ref[...] = jnp.zeros_like(acc_ref)

    acc_ref[...] += jnp.dot(adj_ref[...], s_ref[...],
                            preferred_element_type=jnp.float32)

    @pl.when(k == pl.num_programs(1) - 1)
    def _():
        o_ref[...] = acc_ref[...]


# ---------------------------------------------------------------------------
# Wrapper
# ---------------------------------------------------------------------------
def graph_convolution(inp, adj, weight, bias=None, *,
                      block_n=256, adj_dtype=jnp.bfloat16):
    """adj @ (inp @ weight) (+ bias), matching GraphConvolution.forward.

    block_n:   row/column tile of the (padded) adjacency.  256 fills the
               v6e/v7x 2x256x256 MXU; use 128 on v5e (4x128x128 MXU).
    adj_dtype: stream dtype of adj and the support intermediate (bf16 halves
               the dominant HBM traffic; accumulation stays f32).
    """
    n, f_in = inp.shape
    f_in_w, f_out = weight.shape
    assert adj.shape == (n, n)
    assert f_in_w == f_in

    # Lane-dense output: pad out_features up to a multiple of 128.
    f_out_p = _round_up(f_out, 128)

    # Tile size along N (adjacency rows AND contraction columns).
    if n > block_n:
        assert block_n % 128 == 0, "block_n must be a multiple of 128"
        tn = block_n
    else:
        tn = _round_up(n, 8)          # a single tile covers the whole problem
    n_p = _round_up(n, tn)
    n_blocks = n_p // tn

    # ---- pad / cast operands (cheap, fused by XLA) -------------------------
    x_p = inp.astype(jnp.float32)
    adj_p = adj.astype(adj_dtype)
    if n_p != n:
        x_p = jnp.pad(x_p, ((0, n_p - n), (0, 0)))
        adj_p = jnp.pad(adj_p, ((0, n_p - n), (0, n_p - n)))
    w_p = weight.astype(jnp.float32)
    if f_out_p != f_out:
        w_p = jnp.pad(w_p, ((0, 0), (0, f_out_p - f_out)))
    have_bias = bias is not None
    if have_bias:
        b_p = bias.astype(jnp.float32).reshape(1, f_out)
        if f_out_p != f_out:
            b_p = jnp.pad(b_p, ((0, 0), (0, f_out_p - f_out)))

    if n_blocks == 1:
        # ---- small path: one fused dispatch, everything VMEM resident -------
        in_specs = [
            pl.BlockSpec((tn, tn), lambda i: (0, 0)),          # adj
            pl.BlockSpec((tn, f_in), lambda i: (0, 0)),        # x
            pl.BlockSpec((f_in, f_out_p), lambda i: (0, 0)),   # weight [in,out]
        ]
        args = [adj_p, x_p, w_p]
        if have_bias:
            in_specs.append(pl.BlockSpec((1, f_out_p), lambda i: (0, 0)))
            args.append(b_p)
        kernel = _fused_bias_kernel if have_bias else _fused_nobias_kernel
        out_p = pl.pallas_call(
            kernel,
            out_shape=jax.ShapeDtypeStruct((n_p, f_out_p), jnp.float32),
            grid_spec=pltpu.PrefetchScalarGridSpec(
                num_scalar_prefetch=0,
                grid=(1,),
                in_specs=in_specs,
                out_specs=pl.BlockSpec((tn, f_out_p), lambda i: (0, 0)),
            ),
            compiler_params=pltpu.CompilerParams(
                dimension_semantics=("arbitrary",),
            ),
        )(*args)
    else:
        # ---- stage 1: support = x @ w, each row block computed once --------
        support = pl.pallas_call(
            _support_kernel,
            out_shape=jax.ShapeDtypeStruct((n_p, f_out_p), adj_dtype),
            grid_spec=pltpu.PrefetchScalarGridSpec(
                num_scalar_prefetch=0,
                grid=(n_blocks,),
                in_specs=[
                    pl.BlockSpec((tn, f_in), lambda i: (i, 0)),
                    pl.BlockSpec((f_in, f_out_p), lambda i: (0, 0)),
                ],
                out_specs=pl.BlockSpec((tn, f_out_p), lambda i: (i, 0)),
            ),
            compiler_params=pltpu.CompilerParams(
                dimension_semantics=("parallel",),
            ),
        )(x_p, w_p)

        # ---- stage 2: out = adj @ support (+ bias), bounded tiles -----------
        in_specs = [
            pl.BlockSpec((tn, tn), lambda i, k: (i, k)),        # adj tile
            pl.BlockSpec((tn, f_out_p), lambda i, k: (k, 0)),   # support tile
        ]
        args = [adj_p, support]
        if have_bias:
            in_specs.append(pl.BlockSpec((1, f_out_p), lambda i, k: (0, 0)))
            args.append(b_p)
        kernel = _aggregate_bias_kernel if have_bias else _aggregate_nobias_kernel
        out_p = pl.pallas_call(
            kernel,
            out_shape=jax.ShapeDtypeStruct((n_p, f_out_p), jnp.float32),
            grid_spec=pltpu.PrefetchScalarGridSpec(
                num_scalar_prefetch=0,
                grid=(n_blocks, n_blocks),
                in_specs=in_specs,
                out_specs=pl.BlockSpec((tn, f_out_p), lambda i, k: (i, 0)),
                scratch_shapes=[pltpu.VMEM((tn, f_out_p), jnp.float32)],
            ),
            compiler_params=pltpu.CompilerParams(
                dimension_semantics=("parallel", "arbitrary"),
            ),
        )(*args)

    return out_p[:n, :f_out]


# ---------------------------------------------------------------------------
# Test
# ---------------------------------------------------------------------------
if __name__ == "__main__":
    def make_inputs(key, n, f_in, f_out, with_bias):
        kx, ka, kw, kb = jax.random.split(key, 4)
        x = jax.random.normal(kx, (n, f_in), jnp.float32)
        # Row-normalized random adjacency with self loops (typical GCN input).
        a_raw = (jax.random.uniform(ka, (n, n), jnp.float32) < 0.1).astype(jnp.float32)
        a_raw = a_raw + jnp.eye(n, dtype=jnp.float32)
        adj = a_raw / a_raw.sum(axis=1, keepdims=True)
        # reset_parameters(): U(-stdv, stdv) with stdv = 1/sqrt(out_features).
        stdv = 1.0 / float(jnp.sqrt(jnp.float32(f_out)))
        w = jax.random.uniform(kw, (f_in, f_out), jnp.float32, -stdv, stdv)
        b = (jax.random.uniform(kb, (f_out,), jnp.float32, -stdv, stdv)
             if with_bias else None)
        return x, adj, w, b

    def reference(x, adj, w, b):
        out = jnp.dot(adj, jnp.dot(x, w, precision=jax.lax.Precision.HIGHEST),
                      precision=jax.lax.Precision.HIGHEST)
        return out if b is None else out + b

    key = jax.random.PRNGKey(0)
    cases = [
        # (name, N, F_in, F_out, bias, block_n) -> path exercised
        ("fused_bias",   256, 64, 128, True,  256),  # single fused dispatch
        ("fused_nobias", 100, 32,  64, False, 256),  # fused, padded f_out/N
        ("tiled_bias",   200, 33,  48, True,  128),  # padded N, 2-stage, accumulator
        ("tiled_nobias", 200, 33,  48, False, 128),  # 2-stage, no-bias variant
    ]
    for idx, (name, n, f_in, f_out, with_bias, block_n) in enumerate(cases):
        x, adj, w, b = make_inputs(jax.random.fold_in(key, idx),
                                   n, f_in, f_out, with_bias)
        fn = jax.jit(functools.partial(graph_convolution, block_n=block_n))
        out = jax.block_until_ready(fn(x, adj, w, b))
        ref = reference(x, adj, w, b)
        assert out.shape == (n, f_out) and out.dtype == jnp.float32, name
        # bf16 adjacency/support stream with f32 accumulation -> loose-ish tol.
        assert jnp.allclose(out, ref, rtol=2e-2, atol=2e-2), (
            name, float(jnp.abs(out - ref).max()))
    print("KERNEL_OK")
</pallas_src>

<mosaic_0001>
module attributes {stable_mosaic.version = 11 : i64} {
  func.func @_fused_bias_kernel(%arg0: i32, %arg1: memref<256x256xbf16, #tpu.memory_space<vmem>>, %arg2: memref<256x64xf32, #tpu.memory_space<vmem>>, %arg3: memref<64x128xf32, #tpu.memory_space<vmem>>, %arg4: memref<1x128xf32, #tpu.memory_space<vmem>>, %arg5: memref<256x128xf32, #tpu.memory_space<vmem>>) attributes {dimension_semantics = [#tpu.dimension_semantics<arbitrary>], iteration_bounds = array<i64: 1>, scalar_prefetch = 0 : i64, scratch_operands = 0 : i64, tpu.core_type = #tpu.core_type<tc>, window_params = [{pipeline_mode = #tpu.pipeline_mode<synchronous>, transform_indices = @transform_0, window_bounds = array<i64: 256, 256>}, {pipeline_mode = #tpu.pipeline_mode<synchronous>, transform_indices = @transform_1, window_bounds = array<i64: 256, 64>}, {pipeline_mode = #tpu.pipeline_mode<synchronous>, transform_indices = @transform_2, window_bounds = array<i64: 64, 128>}, {pipeline_mode = #tpu.pipeline_mode<synchronous>, transform_indices = @transform_3, window_bounds = array<i64: 1, 128>}, {pipeline_mode = #tpu.pipeline_mode<synchronous>, transform_indices = @transform_4, window_bounds = array<i64: 256, 128>}]} {
    %c0 = arith.constant 0 : index
    %c0_0 = arith.constant 0 : index
    %0 = vector.load %arg2[%c0, %c0_0] : memref<256x64xf32, #tpu.memory_space<vmem>>, vector<256x64xf32>
    %c0_1 = arith.constant 0 : index
    %c0_2 = arith.constant 0 : index
    %1 = vector.load %arg3[%c0_1, %c0_2] : memref<64x128xf32, #tpu.memory_space<vmem>>, vector<64x128xf32>
    %cst = arith.constant dense<0.000000e+00> : vector<256x128xf32>
    %2 = tpu.matmul %0, %1, %cst {dimension_numbers = #tpu.dot_dimension_numbers<[1], [0], [0], [1], [0, 0, 1, 1], [], []>} : vector<256x64xf32>, vector<64x128xf32>, vector<256x128xf32> -> vector<256x128xf32>
    %c0_3 = arith.constant 0 : index
    %c0_4 = arith.constant 0 : index
    %3 = vector.load %arg1[%c0_3, %c0_4] : memref<256x256xbf16, #tpu.memory_space<vmem>>, vector<256x256xbf16>
    %4 = arith.truncf %2 : vector<256x128xf32> to vector<256x128xbf16>
    %cst_5 = arith.constant dense<0.000000e+00> : vector<256x128xf32>
    %5 = tpu.matmul %3, %4, %cst_5 {dimension_numbers = #tpu.dot_dimension_numbers<[1], [0], [0], [1], [0, 0, 1, 1], [], []>} : vector<256x256xbf16>, vector<256x128xbf16>, vector<256x128xf32> -> vector<256x128xf32>
    %c0_6 = arith.constant 0 : index
    %c0_7 = arith.constant 0 : index
    %6 = vector.load %arg4[%c0_6, %c0_7] : memref<1x128xf32, #tpu.memory_space<vmem>>, vector<1x128xf32>
    %7 = vector.broadcast %6 : vector<1x128xf32> to vector<256x128xf32>
    %8 = arith.addf %5, %7 : vector<256x128xf32>
    %c0_8 = arith.constant 0 : index
    %c0_9 = arith.constant 0 : index
    %9 = vector.load %arg5[%c0_8, %c0_9] : memref<256x128xf32, #tpu.memory_space<vmem>>, vector<256x128xf32>
    tpu.vector_store %arg5[%c0_8, %c0_9], %8 {strides = array<i32>} : memref<256x128xf32, #tpu.memory_space<vmem>>, vector<256x128xf32>,
    return
  }
  func.func @transform_0(%arg0: i32) -> (i32, i32) {
    %c0_i32 = arith.constant 0 : i32
    %c0_i32_0 = arith.constant 0 : i32
    %c0_i32_1 = arith.constant 0 : i32
    return %c0_i32, %c0_i32_0 : i32, i32
  }
  func.func @transform_1(%arg0: i32) -> (i32, i32) {
    %c0_i32 = arith.constant 0 : i32
    %c0_i32_0 = arith.constant 0 : i32
    %c0_i32_1 = arith.constant 0 : i32
    return %c0_i32, %c0_i32_0 : i32, i32
  }
  func.func @transform_2(%arg0: i32) -> (i32, i32) {
    %c0_i32 = arith.constant 0 : i32
    %c0_i32_0 = arith.constant 0 : i32
    %c0_i32_1 = arith.constant 0 : i32
    return %c0_i32, %c0_i32_0 : i32, i32
  }
  func.func @transform_3(%arg0: i32) -> (i32, i32) {
    %c0_i32 = arith.constant 0 : i32
    %c0_i32_0 = arith.constant 0 : i32
    %c0_i32_1 = arith.constant 0 : i32
    return %c0_i32, %c0_i32_0 : i32, i32
  }
  func.func @transform_4(%arg0: i32) -> (i32, i32) {
    %c0_i32 = arith.constant 0 : i32
    %c0_i32_0 = arith.constant 0 : i32
    %c0_i32_1 = arith.constant 0 : i32
    return %c0_i32, %c0_i32_0 : i32, i32
  }
}

</mosaic_0001>

<bundles_post_ra>
// kernel: graph_convolution.1
= control target key start
LH: loop header
LB: loop body
LE: loop exit
PB: predicated region body
PF: predicated region fallthrough
CT: control target
= control target key end

     0   :  { %vm59_vm0 = vcmask 523264   ;;  %s1518_s0 = inlined_call_operand.vmem [shape: bf16[256,256], index: 0, kind: input, shape index: {}]   ;;  %s1519_s1 = inlined_call_operand.vmem [shape: f32[256,64], index: 1, kind: input, shape index: {}]   ;;  %s1520_s2 = inlined_call_operand.vmem [shape: f32[64,128], index: 2, kind: input, shape index: {}]   ;;  %s1521_s3 = inlined_call_operand.vmem [shape: f32[1,128], index: 3, kind: input, shape index: {}]   ;;  %s1522_s4 = inlined_call_operand.hbm [shape: f32[256,128], index: 4, kind: output, shape index: {}]  }
   0x1   :  { %v51_v0 = vld [vmem:[%s1520_s2] sm:$0xff]  ;;  %v52_v1 = vld [vmem:[%s1520_s2 + $0x8] sm:$0xff]  ;;  %v53_v2 = vld [vmem:[%s1520_s2 + $0x10] sm:$0xff] }
   0x2   :  { %v1086_v3 = vpack.c.bf16 %v52_v1, %v51_v0  ;;  %v54_v4 = vld [vmem:[%s1520_s2 + $0x18] sm:$0xff]  ;;  %v55_v6 = vld [vmem:[%s1520_s2 + $0x20] sm:$0xff]  ;;  %v56_v7 = vld [vmem:[%s1520_s2 + $0x28] sm:$0xff] }
   0x3   :  { %v1090_v5 = vpack.c.bf16 %v54_v4, %v53_v2  ;;  %v19_v8 = vld [vmem:[%s1519_s1] sm:$0xff]  ;;  %v1094_v9 = vpack.c.bf16 %v56_v7, %v55_v6  ;;  %v57_v10 = vld [vmem:[%s1520_s2 + $0x30] sm:$0xff]  ;;  %v58_v11 = vld [vmem:[%s1520_s2 + $0x38] sm:$0xff] }
   0x4   :  { %1087 = vmatprep.subr.bf16.mxu0 %v1086_v3  ;;  %1038 = vmatprep.mubr.msk.f32.mxu0 %vm59_vm0, %v19_v8  ;;  %v1098_v12 = vpack.c.bf16 %v58_v11, %v57_v10  ;;  %v20_v13 = vld [vmem:[%s1519_s1 + $0x8] sm:$0xff]  ;;  %v21_v14 = vld [vmem:[%s1519_s1 + $0x10] sm:$0xff]  ;;  %v22_v15 = vld [vmem:[%s1519_s1 + $0x18] sm:$0xff] }
   0x5   :  { %1089 = vmatpush3.bf16.msra.mxu0 %v1086_v3  ;;  %v23_v16 = vld [vmem:[%s1519_s1 + $0x20] sm:$0xff]  ;;  %v24_v17 = vld [vmem:[%s1519_s1 + $0x28] sm:$0xff] }
   0x6   :  { %1091 = vmatprep.subr.bf16.mxu0 %v1090_v5 }
   0x9   :  { %1093 = vmatpush3.bf16.msra.mxu0 %v1090_v5 }
   0xa   :  { %1095 = vmatprep.subr.bf16.mxu0 %v1094_v9 }
   0xd   :  { %1097 = vmatpush3.bf16.msra.mxu0 %v1094_v9 }
   0xe   :  { %1099 = vmatprep.subr.bf16.mxu0 %v1098_v12 }
  0x11   :  { %1101 = vmatpush3.bf16.msra.mxu0 %v1098_v12 }
  0x14   :  { %1039 = vmatmul.mubr.msk.f32.vlgmr.msra.gmra.mrb[0].mxu0 %vm59_vm0, %v20_v13 }
  0x15   :  { %1041 = vmatprep.mubr.msk.f32.mxu0 %vm59_vm0, %v21_v14 }
  0x18   :  { %1042 = vmatmul.mubr.msk.f32.gmra.mrb[2].mxu0 %vm59_vm0, %v22_v15 }
  0x19   :  { %1044 = vmatprep.mubr.msk.f32.mxu0 %vm59_vm0, %v23_v16 }
  0x1a   :  { %9 = vsyncpa [#allocation3], 0  ;;  %v25_v18 = vld [vmem:[%s1519_s1 + $0x30] sm:$0xff]  ;;  %v26_v19 = vld [vmem:[%s1519_s1 + $0x38] sm:$0xff] }
  0x1b   :  { %v27_v20 = vld [vmem:[%s1519_s1 + $0x40] sm:$0xff]  ;;  %v28_v21 = vld [vmem:[%s1519_s1 + $0x48] sm:$0xff]  ;;  %v29_v22 = vld [vmem:[%s1519_s1 + $0x50] sm:$0xff] }
  0x1c   :  { %1045 = vmatmul.mubr.msk.f32.gmra.mrb[4].mxu0 %vm59_vm0, %v24_v17  ;;  %v30_v23 = vld [vmem:[%s1519_s1 + $0x58] sm:$0xff]  ;;  %v31_v24 = vld [vmem:[%s1519_s1 + $0x60] sm:$0xff]  ;;  %v32_v25 = vld [vmem:[%s1519_s1 + $0x68] sm:$0xff] }
  0x1d   :  { %1047 = vmatprep.mubr.msk.f32.mxu0 %vm59_vm0, %v25_v18  ;;  %v33_v26 = vld [vmem:[%s1519_s1 + $0x70] sm:$0xff]  ;;  %v34_v27 = vld [vmem:[%s1519_s1 + $0x78] sm:$0xff]  ;;  %v35_v28 = vld [vmem:[%s1519_s1 + $0x80] sm:$0xff] }
  0x1e   :  { %v36_v29 = vld [vmem:[%s1519_s1 + $0x88] sm:$0xff]  ;;  %v37_v30 = vld [vmem:[%s1519_s1 + $0x90] sm:$0xff]  ;;  %v38_v31 = vld [vmem:[%s1519_s1 + $0x98] sm:$0xff] }
  0x1f   :  { %v39_v32 = vld [vmem:[%s1519_s1 + $0xa0] sm:$0xff]  ;;  %v40_v33 = vld [vmem:[%s1519_s1 + $0xa8] sm:$0xff]  ;;  %v41_v34 = vld [vmem:[%s1519_s1 + $0xb0] sm:$0xff] }
  0x20   :  { %1048 = vmatmul.mubr.msk.f32.gmra.mrb[6].mxu0 %vm59_vm0, %v26_v19  ;;  %v42_v35 = vld [vmem:[%s1519_s1 + $0xb8] sm:$0xff]  ;;  %v43_v36 = vld [vmem:[%s1519_s1 + $0xc0] sm:$0xff]  ;;  %v44_v37 = vld [vmem:[%s1519_s1 + $0xc8] sm:$0xff] }
  0x21   :  { %1050 = vmatprep.mubr.msk.f32.mxu0 %vm59_vm0, %v27_v20  ;;  %v45_v38 = vld [vmem:[%s1519_s1 + $0xd0] sm:$0xff]  ;;  %v46_v39 = vld [vmem:[%s1519_s1 + $0xd8] sm:$0xff]  ;;  %v47_v40 = vld [vmem:[%s1519_s1 + $0xe0] sm:$0xff] }
  0x22   :  { %v48_v41 = vld [vmem:[%s1519_s1 + $0xe8] sm:$0xff]  ;;  %v49_v42 = vld [vmem:[%s1519_s1 + $0xf0] sm:$0xff]  ;;  %v50_v43 = vld [vmem:[%s1519_s1 + $0xf8] sm:$0xff] }
  0x23   :  { %v1123_v44 = vld [vmem:[%s1518_s0 + $0x54] ss:$8 sps:$4 sm:$0xff]   ;;  %v1141_v45 = vld [vmem:[%s1518_s0 + $0x4] ss:$8 sps:$4 sm:$0xff]  }
  0x24   :  { %1051 = vmatmul.mubr.msk.f32.gmra.mrb[8].mxu0 %vm59_vm0, %v28_v21  ;;  %668 = vmatprep.mubr.bf16.mxu1 %v1123_v44  ;;  %v1133_v44 = vld [vmem:[%s1518_s0 + $0x94] ss:$8 sps:$4 sm:$0xff]  }
  0x25   :  { %1053 = vmatprep.mubr.msk.f32.mxu0 %vm59_vm0, %v29_v22 }
  0x28   :  { %1054 = vmatmul.mubr.msk.f32.gmra.mrb[10].mxu0 %vm59_vm0, %v30_v23 }
  0x29   :  { %1056 = vmatprep.mubr.msk.f32.mxu0 %vm59_vm0, %v31_v24 }
  0x2c   :  { %1057 = vmatmul.mubr.msk.f32.gmra.mrb[12].mxu0 %vm59_vm0, %v32_v25 }
  0x2d   :  { %1059 = vmatprep.mubr.msk.f32.mxu0 %vm59_vm0, %v33_v26 }
  0x30   :  { %1060 = vmatmul.mubr.msk.f32.gmra.mrb[14].mxu0 %vm59_vm0, %v34_v27 }
  0x31   :  { %1062 = vmatprep.mubr.msk.f32.mxu0 %vm59_vm0, %v35_v28 }
  0x34   :  { %1063 = vmatmul.mubr.msk.f32.gmra.mrb[16].mxu0 %vm59_vm0, %v36_v29 }
  0x35   :  { %1065 = vmatprep.mubr.msk.f32.mxu0 %vm59_vm0, %v37_v30  ;;  %v1121_v30 = vld [vmem:[%s1518_s0 + $0x50] ss:$8 sps:$4 sm:$0xff]  }
  0x38   :  { %1066 = vmatmul.mubr.msk.f32.gmra.mrb[18].mxu0 %vm59_vm0, %v38_v31  ;;  %v1139_v31 = vld [vmem:[%s1518_s0] ss:$8 sps:$4 sm:$0xff]  }
  0x39   :  { %1068 = vmatprep.mubr.msk.f32.mxu0 %vm59_vm0, %v39_v32  ;;  %v1124_v32 = vld [vmem:[%s1518_s0 + $0x64] ss:$8 sps:$4 sm:$0xff]  }
  0x3c   :  { %1069 = vmatmul.mubr.msk.f32.gmra.mrb[20].mxu0 %vm59_vm0, %v40_v33  ;;  %v1145_v33 = vld [vmem:[%s1518_s0 + $0x14] ss:$8 sps:$4 sm:$0xff]  }
  0x3d   :  { %1071 = vmatprep.mubr.msk.f32.mxu0 %vm59_vm0, %v41_v34  ;;  %v1126_v34 = vld [vmem:[%s1518_s0 + $0x60] ss:$8 sps:$4 sm:$0xff]  }
  0x40   :  { %1072 = vmatmul.mubr.msk.f32.gmra.mrb[22].mxu0 %vm59_vm0, %v42_v35  ;;  %v1147_v35 = vld [vmem:[%s1518_s0 + $0x10] ss:$8 sps:$4 sm:$0xff]  }
  0x41   :  { %1074 = vmatprep.mubr.msk.f32.mxu0 %vm59_vm0, %v43_v36  ;;  %v1127_v36 = vld [vmem:[%s1518_s0 + $0x74] ss:$8 sps:$4 sm:$0xff]  }
  0x44   :  { %1075 = vmatmul.mubr.msk.f32.gmra.mrb[24].mxu0 %vm59_vm0, %v44_v37  ;;  %v1151_v37 = vld [vmem:[%s1518_s0 + $0x24] ss:$8 sps:$4 sm:$0xff]  }
  0x45   :  { %1077 = vmatprep.mubr.msk.f32.mxu0 %vm59_vm0, %v45_v38  ;;  %v1129_v38 = vld [vmem:[%s1518_s0 + $0x70] ss:$8 sps:$4 sm:$0xff]  }
  0x48   :  { %1078 = vmatmul.mubr.msk.f32.gmra.mrb[26].mxu0 %vm59_vm0, %v46_v39  ;;  %v1153_v39 = vld [vmem:[%s1518_s0 + $0x20] ss:$8 sps:$4 sm:$0xff]  }
  0x49   :  { %1080 = vmatprep.mubr.msk.f32.mxu0 %vm59_vm0, %v47_v40  ;;  %v1130_v40 = vld [vmem:[%s1518_s0 + $0x84] ss:$8 sps:$4 sm:$0xff]  }
  0x4c   :  { %1081 = vmatmul.mubr.msk.f32.gmra.mrb[28].mxu0 %vm59_vm0, %v48_v41  ;;  %v1157_v41 = vld [vmem:[%s1518_s0 + $0x34] ss:$8 sps:$4 sm:$0xff]  }
  0x4d   :  { %1083 = vmatprep.mubr.msk.f32.mxu0 %vm59_vm0, %v49_v42  ;;  %v1132_v42 = vld [vmem:[%s1518_s0 + $0x80] ss:$8 sps:$4 sm:$0xff]  }
  0x50   :  { %1084 = vmatmul.mubr.msk.f32.gmra.mrb[30].mxu0 %vm59_vm0, %v50_v43  ;;  %v1159_v43 = vld [vmem:[%s1518_s0 + $0x30] ss:$8 sps:$4 sm:$0xff]  }
  0x51   :  { %628 = vmatprep.mubr.bf16.mxu0 %v1141_v45  ;;  %v1163_v45 = vld [vmem:[%s1518_s0 + $0x44] ss:$8 sps:$4 sm:$0xff]  }
  0xe7   :  { %v1040_v46 = vpop.f32.mrb[0].mxu0 }
  0xe8   :  { %v222_v47 = vpop.f32.mrb[1].mxu0 }
  0xe9   :  { %v413_v48 = vpack.c.bf16 %v1040_v46, %v222_v47  ;;  %v1135_v46 = vld [vmem:[%s1518_s0 + $0x90] ss:$8 sps:$4 sm:$0xff]   ;;  %v1165_v47 = vld [vmem:[%s1518_s0 + $0x40] ss:$8 sps:$4 sm:$0xff]  }
  0xeb   :  { %v1043_v49 = vpop.f32.mrb[2].mxu0 }
  0xec   :  { %v232_v50 = vpop.f32.mrb[3].mxu0 }
  0xed   :  { %v414_v51 = vpack.c.bf16 %v1043_v49, %v232_v50  ;;  %v1138_v49 = vld [vmem:[%s1518_s0 + $0xa0] ss:$8 sps:$4 sm:$0xff]   ;;  %v1142_v50 = vld [vmem:[%s1518_s0 + $0xb4] ss:$8 sps:$4 sm:$0xff]  }
  0xef   :  { %v1046_v52 = vpop.f32.mrb[4].mxu0 }
  0xf0   :  { %v242_v53 = vpop.f32.mrb[5].mxu0 }
  0xf1   :  { %v415_v54 = vpack.c.bf16 %v1046_v52, %v242_v53  ;;  %v1148_v52 = vld [vmem:[%s1518_s0 + $0xc4] ss:$8 sps:$4 sm:$0xff]   ;;  %v1150_v53 = vld [vmem:[%s1518_s0 + $0xc0] ss:$8 sps:$4 sm:$0xff]  }
  0xf3   :  { %v1049_v55 = vpop.f32.mrb[6].mxu0 }
  0xf4   :  { %v252_v56 = vpop.f32.mrb[7].mxu0 }
  0xf5   :  { %v416_v57 = vpack.c.bf16 %v1049_v55, %v252_v56  ;;  %v1156_v55 = vld [vmem:[%s1518_s0 + $0xd0] ss:$8 sps:$4 sm:$0xff]   ;;  %v1160_v56 = vld [vmem:[%s1518_s0 + $0xe4] ss:$8 sps:$4 sm:$0xff]  }
  0xf7   :  { %v1052_v58 = vpop.f32.mrb[8].mxu0 }
  0xf8   :  { %v262_v59 = vpop.f32.mrb[9].mxu0 }
  0xf9   :  { %v417_v60 = vpack.c.bf16 %v1052_v58, %v262_v59  ;;  %v1166_v58 = vld [vmem:[%s1518_s0 + $0xf4] ss:$8 sps:$4 sm:$0xff]   ;;  %v1168_v59 = vld [vmem:[%s1518_s0 + $0xf0] ss:$8 sps:$4 sm:$0xff]  }
  0xfb   :  { %v1055_v61 = vpop.f32.mrb[10].mxu0 }
  0xfc   :  { %v272_v62 = vpop.f32.mrb[11].mxu0 }
  0xfd   :  { %v418_v63 = vpack.c.bf16 %v1055_v61, %v272_v62  ;;  %v1472_v62 = vld [vmem:[%s1521_s3] ss:$0 sm:$0xff] }
  0xff   :  { %v1058_v0 = vpop.f32.mrb[12].mxu0 }
 0x100   :  { %v282_v1 = vpop.f32.mrb[13].mxu0 }
 0x101   :  { %v419_v2 = vpack.c.bf16 %v1058_v0, %v282_v1 }
 0x103   :  { %v1061_v3 = vpop.f32.mrb[14].mxu0 }
 0x104   :  { %v292_v4 = vpop.f32.mrb[15].mxu0 }
 0x105   :  { %v420_v5 = vpack.c.bf16 %v1061_v3, %v292_v4 }
 0x107   :  { %v1064_v6 = vpop.f32.mrb[16].mxu0 }
 0x108   :  { %v302_v7 = vpop.f32.mrb[17].mxu0 }
 0x109   :  { %v421_v8 = vpack.c.bf16 %v1064_v6, %v302_v7 }
 0x10b   :  { %v1067_v9 = vpop.f32.mrb[18].mxu0  ;;  %910 = vmatprep.subr.bf16.mxu0 %v421_v8  ;;  %1102 = vmatprep.subr.bf16.mxu1 %v421_v8 }
 0x10c   :  { %v312_v10 = vpop.f32.mrb[19].mxu0  ;;  %911 = vmatpush3.bf16.msra.mxu0 %v413_v48  ;;  %1110 = vmatpush3.bf16.msra.mxu1 %v413_v48  ;;  %v1136_v48 = vld [vmem:[%s1518_s0 + $0xa4] ss:$8 sps:$4 sm:$0xff]  }
 0x10d   :  { %v422_v11 = vpack.c.bf16 %v1067_v9, %v312_v10 }
 0x10f   :  { %v1070_v12 = vpop.f32.mrb[20].mxu0  ;;  %912 = vmatprep.subr.bf16.mxu0 %v422_v11  ;;  %1103 = vmatprep.subr.bf16.mxu1 %v422_v11 }
 0x110   :  { %v322_v13 = vpop.f32.mrb[21].mxu0  ;;  %913 = vmatpush3.bf16.msra.mxu0 %v414_v51  ;;  %1111 = vmatpush3.bf16.msra.mxu1 %v414_v51  ;;  %v1144_v51 = vld [vmem:[%s1518_s0 + $0xb0] ss:$8 sps:$4 sm:$0xff]  }
 0x111   :  { %v423_v14 = vpack.c.bf16 %v1070_v12, %v322_v13 }
 0x113   :  { %v1073_v15 = vpop.f32.mrb[22].mxu0  ;;  %914 = vmatprep.subr.bf16.mxu0 %v423_v14  ;;  %1104 = vmatprep.subr.bf16.mxu1 %v423_v14 }
 0x114   :  { %v332_v16 = vpop.f32.mrb[23].mxu0  ;;  %915 = vmatpush3.bf16.msra.mxu0 %v415_v54  ;;  %1112 = vmatpush3.bf16.msra.mxu1 %v415_v54  ;;  %v1154_v54 = vld [vmem:[%s1518_s0 + $0xd4] ss:$8 sps:$4 sm:$0xff]  }
 0x115   :  { %v424_v17 = vpack.c.bf16 %v1073_v15, %v332_v16 }
 0x117   :  { %v1076_v18 = vpop.f32.mrb[24].mxu0  ;;  %916 = vmatprep.subr.bf16.mxu0 %v424_v17  ;;  %1105 = vmatprep.subr.bf16.mxu1 %v424_v17 }
 0x118   :  { %v342_v19 = vpop.f32.mrb[25].mxu0  ;;  %917 = vmatpush3.bf16.msra.mxu0 %v416_v57  ;;  %1113 = vmatpush3.bf16.msra.mxu1 %v416_v57  ;;  %v1162_v57 = vld [vmem:[%s1518_s0 + $0xe0] ss:$8 sps:$4 sm:$0xff]   ;;  %s1193_s0 = smov [#allocation2]  }
 0x119   :  { %v425_v20 = vpack.c.bf16 %v1076_v18, %v342_v19  ;;  %s794_s3 = sshll.u32 %s1193_s0, 4  ;;  %s795_s3 = int_to_ptr.vmem [resolvable:$true] %s794_s3 }
 0x11a   :  { %s1169_s23 = scalar_lea.vmem %s795_s3, 4096  ;;  %p1174_p1 = scmp.lt.s32.totalorder %s795_s3, %s795_s3 }
 0x11b   :  { %v1079_v21 = vpop.f32.mrb[26].mxu0  ;;  %918 = vmatprep.subr.bf16.mxu0 %v425_v20  ;;  %1106 = vmatprep.subr.bf16.mxu1 %v425_v20  ;;  %p1170_p0 = scmp.ne.s32.totalorder %s795_s3, %s1169_s23  ;;  %p1175_p2 = scmp.lt.s32.totalorder %s1169_s23, %s1169_s23 }
 0x11c   :  { %v352_v22 = vpop.f32.mrb[27].mxu0  ;;  %919 = vmatpush3.bf16.msra.mxu0 %v417_v60  ;;  %1114 = vmatpush3.bf16.msra.mxu1 %v417_v60 }
 0x11d   :  { %v426_v23 = vpack.c.bf16 %v1079_v21, %v352_v22  ;;  %p1176_p3 = por %p1175_p2, %p1174_p1 }
 0x11f   :  { %v1082_v24 = vpop.f32.mrb[28].mxu0  ;;  %920 = vmatprep.subr.bf16.mxu0 %v426_v23  ;;  %1107 = vmatprep.subr.bf16.mxu1 %v426_v23  ;;  %p1177_p4 = pnand %p1176_p3, %p1170_p0 }
 0x120   :  { %v362_v25 = vpop.f32.mrb[29].mxu0  ;;  %921 = vmatpush3.bf16.msra.mxu0 %v418_v63  ;;  %1115 = vmatpush3.bf16.msra.mxu1 %v418_v63 }
 0x121   :  { %v427_v26 = vpack.c.bf16 %v1082_v24, %v362_v25 }
 0x123   :  { %v1085_v27 = vpop.f32.mrb[30].mxu0  ;;  %922 = vmatprep.subr.bf16.mxu0 %v427_v26  ;;  %1108 = vmatprep.subr.bf16.mxu1 %v427_v26 }
 0x124   :  { %v372_v28 = vpop.f32.mrb[31].mxu0  ;;  %923 = vmatpush3.bf16.msra.mxu0 %v419_v2  ;;  %1116 = vmatpush3.bf16.msra.mxu1 %v419_v2 }
 0x125   :  { %v428_v29 = vpack.c.bf16 %v1085_v27, %v372_v28 }
 0x127   :  { %924 = vmatprep.subr.bf16.mxu0 %v428_v29  ;;  %1109 = vmatprep.subr.bf16.mxu1 %v428_v29 }
 0x128   :  { %925 = vmatpush3.bf16.msra.mxu0 %v420_v5  ;;  %1117 = vmatpush3.bf16.msra.mxu1 %v420_v5 }
 0x12b   :  { %669 = vmatmul.mubr.bf16.vlgmr.msra.gmra.mrb[0].mxu1 %v1121_v30  ;;  %629 = vmatmul.mubr.bf16.vlgmr.msra.gmra.mrb[32].mxu0 %v1139_v31 }
 0x12c   :  { %676 = vmatprep.mubr.bf16.mxu1 %v1124_v32  ;;  %636 = vmatprep.mubr.bf16.mxu0 %v1145_v33 }
 0x133   :  { %677 = vmatmul.mubr.bf16.gmra.mrb[4].mxu1 %v1126_v34  ;;  %637 = vmatmul.mubr.bf16.gmra.mrb[36].mxu0 %v1147_v35 }
 0x134   :  { %684 = vmatprep.mubr.bf16.mxu1 %v1127_v36  ;;  %644 = vmatprep.mubr.bf16.mxu0 %v1151_v37 }
 0x13b   :  { %685 = vmatmul.mubr.bf16.gmra.mrb[8].mxu1 %v1129_v38  ;;  %645 = vmatmul.mubr.bf16.gmra.mrb[40].mxu0 %v1153_v39 }
 0x13c   :  { %692 = vmatprep.mubr.bf16.mxu1 %v1130_v40  ;;  %652 = vmatprep.mubr.bf16.mxu0 %v1157_v41 }
 0x143   :  { %693 = vmatmul.mubr.bf16.gmra.mrb[12].mxu1 %v1132_v42  ;;  %653 = vmatmul.mubr.bf16.gmra.mrb[44].mxu0 %v1159_v43 }
 0x144   :  { %700 = vmatprep.mubr.bf16.mxu1 %v1133_v44  ;;  %660 = vmatprep.mubr.bf16.mxu0 %v1163_v45 }
 0x14b   :  { %701 = vmatmul.mubr.bf16.gmra.mrb[16].mxu1 %v1135_v46  ;;  %661 = vmatmul.mubr.bf16.gmra.mrb[48].mxu0 %v1165_v47 }
 0x14c   :  { %708 = vmatprep.mubr.bf16.mxu1 %v1136_v48 }
 0x153   :  { %709 = vmatmul.mubr.bf16.gmra.mrb[20].mxu1 %v1138_v49 }
 0x154   :  { %716 = vmatprep.mubr.bf16.mxu1 %v1142_v50 }
 0x15b   :  { %717 = vmatmul.mubr.bf16.gmra.mrb[24].mxu1 %v1144_v51 }
 0x15c   :  { %724 = vmatprep.mubr.bf16.mxu1 %v1148_v52 }
 0x163   :  { %725 = vmatmul.mubr.bf16.gmra.mrb[28].mxu1 %v1150_v53 }
 0x164   :  { %732 = vmatprep.mubr.bf16.mxu1 %v1154_v54 }
 0x16b   :  { %733 = vmatmul.mubr.bf16.gmra.mrb[32].mxu1 %v1156_v55 }
 0x16c   :  { %740 = vmatprep.mubr.bf16.mxu1 %v1160_v56 }
 0x173   :  { %741 = vmatmul.mubr.bf16.gmra.mrb[36].mxu1 %v1162_v57 }
 0x174   :  { %748 = vmatprep.mubr.bf16.mxu1 %v1166_v58 }
 0x17b   :  { %749 = vmatmul.mubr.bf16.gmra.mrb[40].mxu1 %v1168_v59 }
 0x1fe   :  { %v956_v60 = vpop.f32.mrb[0].mxu1  ;;  %v926_v61 = vpop.f32.mrb[32].mxu0 }
 0x1ff   :  { %v957_v63 = vpop.f32.mrb[1].mxu1  ;;  %v927_v0 = vpop.f32.mrb[33].mxu0 }
 0x200   :  { %v958_v1 = vadd.f32 %v957_v63, %v956_v60  ;;  %v959_v2 = vpop.f32.mrb[2].mxu1  ;;  %v928_v3 = vadd.f32 %v927_v0, %v926_v61  ;;  %v929_v4 = vpop.f32.mrb[34].mxu0 }
 0x201   :  { %v960_v5 = vpop.f32.mrb[3].mxu1  ;;  %v930_v6 = vpop.f32.mrb[35].mxu0 }
 0x202   :  { %v671_v7 = vadd.f32 %v958_v1, %v1472_v62  ;;  %v961_v8 = vadd.f32 %v960_v5, %v959_v2  ;;  %v631_v9 = vadd.f32 %v928_v3, %v1472_v62  ;;  %v931_v10 = vadd.f32 %v930_v6, %v929_v4 }
 0x204   :  { %767 = vst [vmem:[#allocation2 + $0x50] sm:$0xff] %v671_v7  ;;  %v674_v11 = vadd.f32 %v961_v8, %v1472_v62  ;;  %757 = vst [vmem:[#allocation2] sm:$0xff] %v631_v9  ;;  %v634_v12 = vadd.f32 %v931_v10, %v1472_v62 }
 0x206   :  { %768 = vst [vmem:[#allocation2 + $0x58] sm:$0xff] %v674_v11  ;;  %v962_v13 = vpop.f32.mrb[4].mxu1  ;;  %758 = vst [vmem:[#allocation2 + $0x8] sm:$0xff] %v634_v12  ;;  %v932_v14 = vpop.f32.mrb[36].mxu0 }
 0x207   :  { %v963_v15 = vpop.f32.mrb[5].mxu1  ;;  %v933_v16 = vpop.f32.mrb[37].mxu0 }
 0x208   :  { %v964_v17 = vadd.f32 %v963_v15, %v962_v13  ;;  %v965_v18 = vpop.f32.mrb[6].mxu1  ;;  %v934_v19 = vadd.f32 %v933_v16, %v932_v14  ;;  %v935_v20 = vpop.f32.mrb[38].mxu0 }
 0x209   :  { %v966_v21 = vpop.f32.mrb[7].mxu1  ;;  %v936_v22 = vpop.f32.mrb[39].mxu0 }
 0x20a   :  { %v679_v23 = vadd.f32 %v964_v17, %v1472_v62  ;;  %v967_v24 = vadd.f32 %v966_v21, %v965_v18  ;;  %v639_v25 = vadd.f32 %v934_v19, %v1472_v62  ;;  %v937_v26 = vadd.f32 %v936_v22, %v935_v20 }
 0x20c   :  { %769 = vst [vmem:[#allocation2 + $0x60] sm:$0xff] %v679_v23  ;;  %v682_v27 = vadd.f32 %v967_v24, %v1472_v62  ;;  %759 = vst [vmem:[#allocation2 + $0x10] sm:$0xff] %v639_v25  ;;  %v642_v28 = vadd.f32 %v937_v26, %v1472_v62 }
 0x20e   :  { %770 = vst [vmem:[#allocation2 + $0x68] sm:$0xff] %v682_v27  ;;  %v968_v29 = vpop.f32.mrb[8].mxu1  ;;  %760 = vst [vmem:[#allocation2 + $0x18] sm:$0xff] %v642_v28  ;;  %v938_v30 = vpop.f32.mrb[40].mxu0 }
 0x20f   :  { %v969_v31 = vpop.f32.mrb[9].mxu1  ;;  %v939_v32 = vpop.f32.mrb[41].mxu0 }
 0x210   :  { %v970_v33 = vadd.f32 %v969_v31, %v968_v29  ;;  %v971_v34 = vpop.f32.mrb[10].mxu1  ;;  %v940_v35 = vadd.f32 %v939_v32, %v938_v30  ;;  %v941_v36 = vpop.f32.mrb[42].mxu0 }
 0x211   :  { %v972_v37 = vpop.f32.mrb[11].mxu1  ;;  %v942_v38 = vpop.f32.mrb[43].mxu0 }
 0x212   :  { %v687_v39 = vadd.f32 %v970_v33, %v1472_v62  ;;  %v973_v40 = vadd.f32 %v972_v37, %v971_v34  ;;  %v647_v41 = vadd.f32 %v940_v35, %v1472_v62  ;;  %v943_v42 = vadd.f32 %v942_v38, %v941_v36 }
 0x214   :  { %771 = vst [vmem:[#allocation2 + $0x70] sm:$0xff] %v687_v39  ;;  %v690_v43 = vadd.f32 %v973_v40, %v1472_v62  ;;  %761 = vst [vmem:[#allocation2 + $0x20] sm:$0xff] %v647_v41  ;;  %v650_v44 = vadd.f32 %v943_v42, %v1472_v62 }
 0x216   :  { %772 = vst [vmem:[#allocation2 + $0x78] sm:$0xff] %v690_v43  ;;  %v974_v45 = vpop.f32.mrb[12].mxu1  ;;  %762 = vst [vmem:[#allocation2 + $0x28] sm:$0xff] %v650_v44  ;;  %v944_v46 = vpop.f32.mrb[44].mxu0 }
 0x217   :  { %v975_v47 = vpop.f32.mrb[13].mxu1  ;;  %v945_v48 = vpop.f32.mrb[45].mxu0 }
 0x218   :  { %v976_v49 = vadd.f32 %v975_v47, %v974_v45  ;;  %v977_v50 = vpop.f32.mrb[14].mxu1  ;;  %v946_v51 = vadd.f32 %v945_v48, %v944_v46  ;;  %v947_v52 = vpop.f32.mrb[46].mxu0 }
 0x219   :  { %v978_v53 = vpop.f32.mrb[15].mxu1  ;;  %v948_v54 = vpop.f32.mrb[47].mxu0 }
 0x21a   :  { %v695_v55 = vadd.f32 %v976_v49, %v1472_v62  ;;  %v979_v56 = vadd.f32 %v978_v53, %v977_v50  ;;  %v655_v57 = vadd.f32 %v946_v51, %v1472_v62  ;;  %v949_v58 = vadd.f32 %v948_v54, %v947_v52 }
 0x21c   :  { %773 = vst [vmem:[#allocation2 + $0x80] sm:$0xff] %v695_v55  ;;  %v698_v59 = vadd.f32 %v979_v56, %v1472_v62  ;;  %763 = vst [vmem:[#allocation2 + $0x30] sm:$0xff] %v655_v57  ;;  %v658_v60 = vadd.f32 %v949_v58, %v1472_v62 }
 0x21e   :  { %774 = vst [vmem:[#allocation2 + $0x88] sm:$0xff] %v698_v59  ;;  %v980_v61 = vpop.f32.mrb[16].mxu1  ;;  %764 = vst [vmem:[#allocation2 + $0x38] sm:$0xff] %v658_v60  ;;  %v950_v63 = vpop.f32.mrb[48].mxu0 }
 0x21f   :  { %v981_v0 = vpop.f32.mrb[17].mxu1  ;;  %v951_v1 = vpop.f32.mrb[49].mxu0 }
 0x220   :  { %v982_v2 = vadd.f32 %v981_v0, %v980_v61  ;;  %v983_v3 = vpop.f32.mrb[18].mxu1  ;;  %v952_v4 = vadd.f32 %v951_v1, %v950_v63  ;;  %v953_v5 = vpop.f32.mrb[50].mxu0 }
 0x221   :  { %v984_v6 = vpop.f32.mrb[19].mxu1  ;;  %v954_v7 = vpop.f32.mrb[51].mxu0 }
 0x222   :  { %v703_v8 = vadd.f32 %v982_v2, %v1472_v62  ;;  %v985_v9 = vadd.f32 %v984_v6, %v983_v3  ;;  %v663_v10 = vadd.f32 %v952_v4, %v1472_v62  ;;  %v955_v11 = vadd.f32 %v954_v7, %v953_v5 }
 0x224   :  { %775 = vst [vmem:[#allocation2 + $0x90] sm:$0xff] %v703_v8  ;;  %v706_v12 = vadd.f32 %v985_v9, %v1472_v62  ;;  %765 = vst [vmem:[#allocation2 + $0x40] sm:$0xff] %v663_v10  ;;  %v666_v13 = vadd.f32 %v955_v11, %v1472_v62 }
 0x226   :  { %776 = vst [vmem:[#allocation2 + $0x98] sm:$0xff] %v706_v12  ;;  %v986_v14 = vpop.f32.mrb[20].mxu1  ;;  %766 = vst [vmem:[#allocation2 + $0x48] sm:$0xff] %v666_v13 }
 0x227   :  { %v987_v15 = vpop.f32.mrb[21].mxu1 }
 0x228   :  { %v988_v16 = vadd.f32 %v987_v15, %v986_v14  ;;  %v989_v17 = vpop.f32.mrb[22].mxu1 }
 0x229   :  { %v990_v18 = vpop.f32.mrb[23].mxu1 }
 0x22a   :  { %v711_v19 = vadd.f32 %v988_v16, %v1472_v62  ;;  %v991_v20 = vadd.f32 %v990_v18, %v989_v17 }
 0x22c   :  { %777 = vst [vmem:[#allocation2 + $0xa0] sm:$0xff] %v711_v19  ;;  %v714_v21 = vadd.f32 %v991_v20, %v1472_v62 }
 0x22e   :  { %778 = vst [vmem:[#allocation2 + $0xa8] sm:$0xff] %v714_v21  ;;  %v992_v22 = vpop.f32.mrb[24].mxu1 }
 0x22f   :  { %v993_v23 = vpop.f32.mrb[25].mxu1 }
 0x230   :  { %v994_v24 = vadd.f32 %v993_v23, %v992_v22  ;;  %v995_v25 = vpop.f32.mrb[26].mxu1 }
 0x231   :  { %v996_v26 = vpop.f32.mrb[27].mxu1 }
 0x232   :  { %v719_v27 = vadd.f32 %v994_v24, %v1472_v62  ;;  %v997_v28 = vadd.f32 %v996_v26, %v995_v25 }
 0x234   :  { %779 = vst [vmem:[#allocation2 + $0xb0] sm:$0xff] %v719_v27  ;;  %v722_v29 = vadd.f32 %v997_v28, %v1472_v62 }
 0x236   :  { %780 = vst [vmem:[#allocation2 + $0xb8] sm:$0xff] %v722_v29  ;;  %v998_v30 = vpop.f32.mrb[28].mxu1 }
 0x237   :  { %v999_v31 = vpop.f32.mrb[29].mxu1 }
 0x238   :  { %v1000_v32 = vadd.f32 %v999_v31, %v998_v30  ;;  %v1001_v33 = vpop.f32.mrb[30].mxu1 }
 0x239   :  { %v1002_v34 = vpop.f32.mrb[31].mxu1 }
 0x23a   :  { %v727_v35 = vadd.f32 %v1000_v32, %v1472_v62  ;;  %v1003_v36 = vadd.f32 %v1002_v34, %v1001_v33 }
 0x23c   :  { %781 = vst [vmem:[#allocation2 + $0xc0] sm:$0xff] %v727_v35  ;;  %v730_v37 = vadd.f32 %v1003_v36, %v1472_v62 }
 0x23e   :  { %782 = vst [vmem:[#allocation2 + $0xc8] sm:$0xff] %v730_v37  ;;  %v1004_v38 = vpop.f32.mrb[32].mxu1 }
 0x23f   :  { %v1005_v39 = vpop.f32.mrb[33].mxu1 }
 0x240   :  { %v1006_v40 = vadd.f32 %v1005_v39, %v1004_v38  ;;  %v1007_v41 = vpop.f32.mrb[34].mxu1 }
 0x241   :  { %v1008_v42 = vpop.f32.mrb[35].mxu1 }
 0x242   :  { %v735_v43 = vadd.f32 %v1006_v40, %v1472_v62  ;;  %v1009_v44 = vadd.f32 %v1008_v42, %v1007_v41 }
 0x244   :  { %783 = vst [vmem:[#allocation2 + $0xd0] sm:$0xff] %v735_v43  ;;  %v738_v45 = vadd.f32 %v1009_v44, %v1472_v62 }
 0x246   :  { %784 = vst [vmem:[#allocation2 + $0xd8] sm:$0xff] %v738_v45  ;;  %v1010_v46 = vpop.f32.mrb[36].mxu1 }
 0x247   :  { %v1011_v47 = vpop.f32.mrb[37].mxu1 }
 0x248   :  { %v1012_v48 = vadd.f32 %v1011_v47, %v1010_v46  ;;  %v1013_v49 = vpop.f32.mrb[38].mxu1 }
 0x249   :  { %v1014_v50 = vpop.f32.mrb[39].mxu1 }
 0x24a   :  { %v743_v51 = vadd.f32 %v1012_v48, %v1472_v62  ;;  %v1015_v52 = vadd.f32 %v1014_v50, %v1013_v49 }
 0x24c   :  { %785 = vst [vmem:[#allocation2 + $0xe0] sm:$0xff] %v743_v51  ;;  %v746_v53 = vadd.f32 %v1015_v52, %v1472_v62 }
 0x24e   :  { %786 = vst [vmem:[#allocation2 + $0xe8] sm:$0xff] %v746_v53  ;;  %v1016_v54 = vpop.f32.mrb[40].mxu1 }
 0x24f   :  { %v1017_v55 = vpop.f32.mrb[41].mxu1 }
 0x250   :  { %v1018_v56 = vadd.f32 %v1017_v55, %v1016_v54  ;;  %v1019_v57 = vpop.f32.mrb[42].mxu1 }
 0x251   :  { %v1020_v58 = vpop.f32.mrb[43].mxu1 }
 0x252   :  { %v751_v59 = vadd.f32 %v1018_v56, %v1472_v62  ;;  %v1021_v60 = vadd.f32 %v1020_v58, %v1019_v57 }
 0x254   :  { %787 = vst [vmem:[#allocation2 + $0xf0] sm:$0xff] %v751_v59  ;;  %v754_v61 = vadd.f32 %v1021_v60, %v1472_v62 }
 0x256   :  { %788 = vst [vmem:[#allocation2 + $0xf8] sm:$0xff] %v754_v61 }
 0x257   :  { %1180 = shalt.err (!%p1177_p4)
}
 0x258   :  { %s1181_s26 = scalar_lea.hbm %s1522_s4, 4096 }
 0x259   :  { %p1182_p5 = scmp.ne.s32.totalorder %s1522_s4, %s1181_s26  ;;  %p1185_p6 = scmp.lt.u32.totalorder %s1181_s26, %s1522_s4 }
 0x25b   :  { %p1187_p7 = pnand %p1185_p6, %p1182_p5 }
 0x25d   :  { %1190 = shalt.err (!%p1187_p7)
}
 0x25e   :  { %s1194_s5 = smov 128   ;;  %s1195_s6 = smov 8  }
 0x25f   :  { %800 = dma.vmem_to_hbm [thread:$0]  %s795_s3, 4096, %s1522_s4, [#allocation3], %s1194_s5, %s1194_s5, %s1195_s6  }
 0x260   :  { %1191 = dma.done.wait [#allocation3], 4096  }
 0x261   :  { %1192 = vsyncadd [#allocation3], 4294963200 }
 0x262   :  { %804 = vsyncpa [#allocation3], 1 }

</bundles_post_ra>
